<compile_context>
chip_gen: v6e
topology: v6e:2x2x1
jax: 0.10.0
libtpu: 0.0.40
codegen_flags: <defaults>
</compile_context>

<pallas_src>
import functools

import jax
import jax.numpy as jnp
from jax.experimental import pallas as pl
from jax.experimental.pallas import tpu as pltpu

# f32 parity with the PyTorch/JAX reference.  On v5e, Precision.HIGH (bf16x3)
# halves MXU passes and usually still passes a 1e-5 check -- verify first.
_MATMUL_PRECISION = jax.lax.Precision.HIGHEST


def _fused_mlp_kernel(xT_ref, p_ref, out_ref, *, dims, band):
    """Whole MLP (Linear -> Tanh -> ... -> Linear) on one batch tile.

    Activations are feature-major [F, block_n]: batch rides the 128-lane axis,
    so every store is lane-dense and W @ h needs no transpose.
    `p_ref` is the packed parameter buffer; layer i lives in lane band
    [i*band, (i+1)*band).
    """
    n_layers = len(dims)
    h = xT_ref[...].astype(jnp.float32)                    # [in_0, tn]
    for i, (out_f, in_f) in enumerate(dims):
        c0 = i * band
        if out_f == 1:
            # Single-output layer: VPU multiply + XLU cross-sublane reduce
            # instead of a 1-row MXU matmul.  Weight is stored transposed as
            # a [in_f, 1] column at lane c0; bias scalar at [0, c0+1].
            w_col = p_ref[0:in_f, c0:c0 + 1]                # [in_f, 1]
            b = p_ref[0:1, c0 + 1:c0 + 2]                   # [1, 1]
            y = jnp.sum(w_col * h, axis=0, keepdims=True) + b
        elif in_f <= 4:
            # Tiny contraction (the 2-wide (x, t) input layer): a couple of
            # VPU broadcast multiply-adds beat a ~99%-idle MXU.
            y = p_ref[0:out_f, c0 + in_f:c0 + in_f + 1]     # bias column
            for k in range(in_f):
                w_k = p_ref[0:out_f, c0 + k:c0 + k + 1]     # [out_f, 1]
                y = y + w_k * h[k:k + 1, :]
        else:
            # Regular hidden layer: MXU matmul, full-f32 accumulation.
            w = p_ref[0:out_f, c0:c0 + in_f]                # [out_f, in_f]
            b = p_ref[0:out_f, c0 + in_f:c0 + in_f + 1]     # [out_f, 1]
            y = jnp.dot(w, h, preferred_element_type=jnp.float32,
                        precision=_MATMUL_PRECISION) + b
        h = jnp.tanh(y) if i != n_layers - 1 else y
    out_ref[...] = h.astype(out_ref.dtype)                  # lane-dense store


def _pick_block_n(n: int) -> int:
    """Batch (lane-axis) tile.

    The kernel is latency-bound at small N on every generation (v5e/v6e have
    one TensorCore; sharding v7x's two cores only pays once per-core work is
    large), so keep a single grid step until a step would carry >= 512 lanes.
    Above that, lane-aligned 512-wide blocks keep each live [32, block_n]
    activation at <= 16 vregs (the 64x4KiB vreg file is the real ceiling,
    identical on v5e/v6e/v7x) and stay on the HBM-roofline plateau; a ragged
    tail block is masked correctly by Pallas.
    """
    if n <= 512:
        return n
    return 512


def pack_mlp_params(params):
    """Pack all Linear weights/biases into ONE lane-aligned f32 buffer.

    Layer i occupies its own `band`-lane band (band is a multiple of 128) so
    in-kernel static slices start on (8,128) tile boundaries and a single
    resident DMA replaces 2*L tiny sub-vreg ones.
      * regular layer : cols [0:in_f] = W[out_f, in_f], col in_f = bias column
      * out_f==1 layer: col 0 = W^T as [in_f, 1], bias scalar at [0, 1]
    Returns (packed, dims, band); dims is a static tuple of (out_f, in_f).
    """
    dims = tuple((int(w.shape[0]), int(w.shape[1])) for w, _ in params)
    needed = max((2 if of == 1 else inf + 1) for of, inf in dims)
    band = ((needed + 127) // 128) * 128
    rows = max((inf if of == 1 else of) for of, inf in dims)
    rows = ((max(rows, 8) + 7) // 8) * 8
    packed = jnp.zeros((rows, band * len(params)), jnp.float32)
    for i, (w, b) in enumerate(params):
        of, inf = dims[i]
        c0 = i * band
        w = w.astype(jnp.float32)
        b = b.astype(jnp.float32)
        if of == 1:
            packed = packed.at[0:inf, c0:c0 + 1].set(w.T)           # [in_f, 1]
            packed = packed.at[0:1, c0 + 1:c0 + 2].set(b.reshape(1, 1))
        else:
            packed = packed.at[0:of, c0:c0 + inf].set(w)
            packed = packed.at[0:of, c0 + inf:c0 + inf + 1].set(b.reshape(of, 1))
    return packed, dims, band


@functools.partial(jax.jit, static_argnames=("dims", "band", "block_n"))
def mlp_forward(x, packed, dims, band, block_n=None):
    """Fused MLP forward.  x: [N, in0] (batch-major, PyTorch layout)."""
    n, in0 = x.shape
    assert in0 == dims[0][1]
    out_last = dims[-1][0]

    if block_n is None:
        block_n = _pick_block_n(n)
    block_n = min(block_n, n)
    grid = (pl.cdiv(n, block_n),)

    # Feature-major inside the kernel: batch rides the 128-lane axis.  The
    # transpose is allowed to fuse into the pallas_call input, so under jit it
    # is not a separate XLA dispatch.
    xT = x.T                                               # [in0, N]

    flops = sum(2 * of * inf * n + of * n for of, inf in dims)
    transcendentals = sum(of * n for of, inf in dims[:-1])     # tanh count
    bytes_accessed = (x.size + packed.size + n * out_last) * 4

    kernel = functools.partial(_fused_mlp_kernel, dims=dims, band=band)
    yT = pl.pallas_call(
        kernel,
        out_shape=jax.ShapeDtypeStruct((out_last, n), x.dtype),
        grid_spec=pltpu.PrefetchScalarGridSpec(
            num_scalar_prefetch=0,
            grid=grid,
            in_specs=[
                pl.BlockSpec((in0, block_n), lambda i: (0, i)),     # xT tile
                pl.BlockSpec(packed.shape, lambda i: (0, 0)),       # resident params
            ],
            out_specs=pl.BlockSpec((out_last, block_n), lambda i: (0, i)),
        ),
        compiler_params=pltpu.CompilerParams(
            dimension_semantics=("parallel",),
            allow_input_fusion=[True, False],
        ),
        cost_estimate=pl.CostEstimate(
            flops=flops,
            transcendentals=transcendentals,
            bytes_accessed=bytes_accessed,
        ),
    )(xT, packed)
    return yT.T                                            # [N, out_last] (free relayout)


def init_mlp_params(layers, key):
    """nn.Linear-shaped params: W:[out,in], b:[out], U(-1/sqrt(in), 1/sqrt(in))."""
    params = []
    for i in range(len(layers) - 1):
        fan_in, fan_out = layers[i], layers[i + 1]
        key, kw, kb = jax.random.split(key, 3)
        bound = 1.0 / (fan_in ** 0.5)
        w = jax.random.uniform(kw, (fan_out, fan_in), jnp.float32, -bound, bound)
        b = jax.random.uniform(kb, (fan_out,), jnp.float32, -bound, bound)
        params.append((w, b))
    return params


def mlp_reference(x, params):
    """Pure-JAX reference: Linear -> Tanh -> ... -> Linear (no final tanh)."""
    h = x
    for i, (w, b) in enumerate(params):
        h = jax.lax.dot_general(
            h, w, dimension_numbers=(((1,), (1,)), ((), ())),
            precision=jax.lax.Precision.HIGHEST) + b
        if i != len(params) - 1:
            h = jnp.tanh(h)
    return h


if __name__ == "__main__":
    # Burgers-style MLP: input (x, t) -> hidden -> hidden -> u
    layers = [2, 32, 32, 1]
    key = jax.random.PRNGKey(0)
    key, kx = jax.random.split(key)

    n_points = 256
    x = jax.random.normal(kx, (n_points, layers[0]), dtype=jnp.float32)
    params = init_mlp_params(layers, key)

    # One-time parameter packing (init time, not per call).
    packed, dims, band = pack_mlp_params(params)

    out = mlp_forward(x, packed, dims=dims, band=band)
    out = jax.block_until_ready(out)

    ref = mlp_reference(x, params)
    assert out.shape == (n_points, layers[-1])
    assert jnp.allclose(out, ref, atol=1e-5, rtol=1e-5), "mismatch vs reference"

    print("KERNEL_OK")
</pallas_src>

<mosaic_0001>
module attributes {stable_mosaic.version = 11 : i64} {
  func.func @_fused_mlp_kernel(%arg0: i32, %arg1: memref<2x256xf32, #tpu.memory_space<vmem>>, %arg2: memref<32x384xf32, #tpu.memory_space<vmem>>, %arg3: memref<1x256xf32, #tpu.memory_space<vmem>>) attributes {dimension_semantics = [#tpu.dimension_semantics<parallel>], iteration_bounds = array<i64: 1>, scalar_prefetch = 0 : i64, scratch_operands = 0 : i64, tpu.core_type = #tpu.core_type<tc>, window_params = [{transform_indices = @transform_0, window_bounds = array<i64: 2, 256>}, {pipeline_mode = #tpu.pipeline_mode<synchronous>, transform_indices = @transform_1, window_bounds = array<i64: 32, 384>}, {transform_indices = @transform_2, window_bounds = array<i64: 1, 256>}]} {
    %c0 = arith.constant 0 : index
    %c0_0 = arith.constant 0 : index
    %0 = vector.load %arg1[%c0, %c0_0] : memref<2x256xf32, #tpu.memory_space<vmem>>, vector<2x256xf32>
    %c0_1 = arith.constant 0 : index
    %c2 = arith.constant 2 : index
    %1 = vector.load %arg2[%c0_1, %c2] : memref<32x384xf32, #tpu.memory_space<vmem>>, vector<32x1xf32>
    %c0_2 = arith.constant 0 : index
    %c0_3 = arith.constant 0 : index
    %2 = vector.load %arg2[%c0_2, %c0_3] : memref<32x384xf32, #tpu.memory_space<vmem>>, vector<32x1xf32>
    %3 = vector.extract_strided_slice %0 {offsets = [0, 0], sizes = [1, 256], strides = [1, 1]} : vector<2x256xf32> to vector<1x256xf32>
    %4 = vector.broadcast %2 : vector<32x1xf32> to vector<32x256xf32>
    %5 = vector.broadcast %3 : vector<1x256xf32> to vector<32x256xf32>
    %6 = arith.mulf %4, %5 : vector<32x256xf32>
    %7 = vector.broadcast %1 : vector<32x1xf32> to vector<32x256xf32>
    %8 = arith.addf %7, %6 : vector<32x256xf32>
    %c0_4 = arith.constant 0 : index
    %c1 = arith.constant 1 : index
    %9 = vector.load %arg2[%c0_4, %c1] : memref<32x384xf32, #tpu.memory_space<vmem>>, vector<32x1xf32>
    %10 = vector.extract_strided_slice %0 {offsets = [1, 0], sizes = [1, 256], strides = [1, 1]} : vector<2x256xf32> to vector<1x256xf32>
    %11 = vector.broadcast %9 : vector<32x1xf32> to vector<32x256xf32>
    %12 = vector.broadcast %10 : vector<1x256xf32> to vector<32x256xf32>
    %13 = arith.mulf %11, %12 : vector<32x256xf32>
    %14 = arith.addf %8, %13 : vector<32x256xf32>
    %15 = math.tanh %14 : vector<32x256xf32>
    %c0_5 = arith.constant 0 : index
    %c128 = arith.constant 128 : index
    %16 = vector.load %arg2[%c0_5, %c128] : memref<32x384xf32, #tpu.memory_space<vmem>>, vector<32x32xf32>
    %c0_6 = arith.constant 0 : index
    %c160 = arith.constant 160 : index
    %17 = vector.load %arg2[%c0_6, %c160] : memref<32x384xf32, #tpu.memory_space<vmem>>, vector<32x1xf32>
    %cst = arith.constant dense<0.000000e+00> : vector<32x256xf32>
    %18 = tpu.matmul %16, %15, %cst {dimension_numbers = #tpu.dot_dimension_numbers<[1], [0], [0], [1], [0, 0, 1, 1], [], []>, precision = #tpu.contract_precision<fp32>} : vector<32x32xf32>, vector<32x256xf32>, vector<32x256xf32> -> vector<32x256xf32>
    %19 = vector.broadcast %17 : vector<32x1xf32> to vector<32x256xf32>
    %20 = arith.addf %18, %19 : vector<32x256xf32>
    %21 = math.tanh %20 : vector<32x256xf32>
    %c0_7 = arith.constant 0 : index
    %c256 = arith.constant 256 : index
    %22 = vector.load %arg2[%c0_7, %c256] : memref<32x384xf32, #tpu.memory_space<vmem>>, vector<32x1xf32>
    %c0_8 = arith.constant 0 : index
    %c257 = arith.constant 257 : index
    %23 = vector.load %arg2[%c0_8, %c257] : memref<32x384xf32, #tpu.memory_space<vmem>>, vector<1x1xf32>
    %24 = vector.broadcast %22 : vector<32x1xf32> to vector<32x256xf32>
    %25 = arith.mulf %24, %21 : vector<32x256xf32>
    %cst_9 = arith.constant dense<0.000000e+00> : vector<256xf32>
    %26 = vector.multi_reduction <add>, %25, %cst_9 [0] : vector<32x256xf32> to vector<256xf32>
    %27 = vector.shape_cast %26 : vector<256xf32> to vector<1x256xf32>
    %28 = vector.broadcast %23 : vector<1x1xf32> to vector<1x256xf32>
    %29 = arith.addf %27, %28 : vector<1x256xf32>
    %c0_10 = arith.constant 0 : index
    %c0_11 = arith.constant 0 : index
    %30 = vector.load %arg3[%c0_10, %c0_11] : memref<1x256xf32, #tpu.memory_space<vmem>>, vector<1x256xf32>
    tpu.vector_store %arg3[%c0_10, %c0_11], %29 {strides = array<i32>} : memref<1x256xf32, #tpu.memory_space<vmem>>, vector<1x256xf32>,
    return
  }
  func.func @transform_0(%arg0: i32) -> (i32, i32) {
    %c0_i32 = arith.constant 0 : i32
    %c0_i32_0 = arith.constant 0 : i32
    return %c0_i32, %arg0 : i32, i32
  }
  func.func @transform_1(%arg0: i32) -> (i32, i32) {
    %c0_i32 = arith.constant 0 : i32
    %c0_i32_0 = arith.constant 0 : i32
    %c0_i32_1 = arith.constant 0 : i32
    return %c0_i32, %c0_i32_0 : i32, i32
  }
  func.func @transform_2(%arg0: i32) -> (i32, i32) {
    %c0_i32 = arith.constant 0 : i32
    %c0_i32_0 = arith.constant 0 : i32
    return %c0_i32, %arg0 : i32, i32
  }
}

</mosaic_0001>

<bundles_post_ra>
// kernel: mlp_forward.2
= control target key start
LH: loop header
LB: loop body
LE: loop exit
PB: predicated region body
PF: predicated region fallthrough
CT: control target
= control target key end

     0   :  { %7 = vsyncpa [#allocation3], 0  ;;  %s1351_s0 = inlined_call_operand.hbm [shape: f32[32,384], index: 0, kind: input, shape index: {}]   ;;  %s1352_s1 = inlined_call_operand.vmem [shape: f32[256,2], index: 1, kind: input, shape index: {}]   ;;  %s1353_s2 = inlined_call_operand.hbm [shape: f32[1,256], index: 2, kind: output, shape index: {}]  }
   0x1   :  { %8 = vsyncpa [#allocation4], 0  ;;  %s1097_s9 = smov [#allocation2]  }
   0x2   :  { %s16_s10 = sshll.u32 %s1097_s9, 4  ;;  %s17_s10 = int_to_ptr.vmem [resolvable:$true] %s16_s10 }
   0x3   :  { %s1061_s11 = scalar_lea.vmem %s17_s10, 1536  ;;  %p1066_p1 = scmp.lt.s32.totalorder %s17_s10, %s17_s10 }
   0x4   :  { %p1062_p0 = scmp.ne.s32.totalorder %s17_s10, %s1061_s11  ;;  %p1067_p2 = scmp.lt.s32.totalorder %s1061_s11, %s1061_s11 }
   0x6   :  { %p1068_p3 = por %p1067_p2, %p1066_p1 }
   0x8   :  { %p1069_p4 = pnand %p1068_p3, %p1062_p0 }
   0xa   :  { %1072 = shalt.err (!%p1069_p4)
}
   0xb   :  { %s1098_s12 = smov 384   ;;  %s1099_s13 = smov 24  }
   0xc   :  { %22 = dma.hbm_to_vmem [thread:$0]  %s1351_s0, 1536, %s17_s10, [#allocation3], %s1098_s12, %s1098_s12, %s1099_s13  }
   0xd   :  { %1093 = dma.done.wait [#allocation3], 1536  }
   0xe   :  { %1094 = vsyncadd [#allocation3], 4294965760  ;;  %v1100_v0 = vmov 2   ;;  %v1101_v1 = vmov 0   ;;  %v40_v2 = vld [vmem:[#allocation2 + $0x48] sm:$0xff]  ;;  %v39_v4 = vld [vmem:[#allocation2 + $0x30] sm:$0xff]  ;;  %v62_v14 = vlaneseq }
   0xf   :  { %1009 = vset.pattern.permute.xlu1 %v1100_v0  ;;  %1008 = vset.pattern.permute.xlu0 %v1101_v1  ;;  %v26_v3 = vld [vmem:[%s1352_s1] sm:$0xf]   ;;  %v1102_v5 = vmov 1   ;;  %v38_v6 = vld [vmem:[#allocation2 + $0x18] sm:$0xff]  ;;  %v1103_v8 = vmov 0.0   ;;  %v1130_v9 = vld [vmem:[#allocation2 + $0x8] sm:$0xff] }
  0x10   :  { %101 = vperm.xlu1 %1009, %v40_v2   ;;  %58 = vperm.xlu0 %1008, %v40_v2   ;;  %29 = vst [vmem:[#allocation6] sm:$0xf] %v26_v3   ;;  %v37_v7 = vld [vmem:[#allocation2] sm:$0xff]  ;;  %v1104_v11 = vmov 32   ;;  %v901_v12 = vld [vmem:[#allocation2 + $0x10] sm:$0xff]  ;;  %v1136_v13 = vld [vmem:[#allocation2 + $0x38] sm:$0xff] }
  0x11   :  { %275 = vmatprep.mubr.f32.mxu0 %v1103_v8  ;;  %424 = vmatprep.mubr.f32.mxu1 %v1103_v8  ;;  %v1132_v10 = vld [vmem:[#allocation2 + $0x20] sm:$0xff]  ;;  %v904_v15 = vld [vmem:[#allocation2 + $0x58] sm:$0xff]  ;;  %v1139_v16 = vld [vmem:[#allocation2 + $0x50] sm:$0xff]  ;;  %v1143_v17 = vshrl.u32 %v62_v14, 7  ;;  %vm194_vm0 = vcmask 261120   ;;  %s1106_s0 = smov [#allocation5]  }
  0x12   :  { %v902_v18 = vld [vmem:[#allocation2 + $0x28] sm:$0xff]  ;;  %v903_v21 = vld [vmem:[#allocation2 + $0x40] sm:$0xff]  ;;  %v905_v27 = vld [vmem:[#allocation2 + $0x10] ss:$0 sm:$0xff]  ;;  %s988_s1 = sshll.u32 %s1106_s0, 4  ;;  %vm979_vm1 = vcmp.lt.s32.totalorder %v62_v14, 256  ;;  %s989_s1 = int_to_ptr.vmem [resolvable:$true] %s988_s1 }
  0x13   :  { %v64_v19 = vsub.s32 0, %v1143_v17  ;;  %v68_v20 = vsub.s32 2, %v1143_v17  ;;  %v130_v25 = vsub.s32 1, %v1143_v17  ;;  %v134_v26 = vsub.s32 3, %v1143_v17  ;;  %s1073_s18 = scalar_lea.vmem %s989_s1, 32  ;;  %p1078_p6 = scmp.lt.s32.totalorder %s989_s1, %s989_s1 }
  0x14   :  { %1010 = vset.pattern.permute.xlu1 %v1102_v5  ;;  %53 = vperm.xlu0 %1008, %v39_v4   ;;  %p1074_p5 = scmp.ne.s32.totalorder %s989_s1, %s1073_s18  ;;  %p1079_p7 = scmp.lt.s32.totalorder %s1073_s18, %s1073_s18 }
  0x15   :  { %125 = vperm.xlu1 %1010, %v40_v2  }
  0x16   :  { %p1080_p8 = por %p1079_p7, %p1078_p6 }
  0x17   :  { %v36_v22 = vld [vmem:[#allocation6] sm:$0xf] }
  0x18   :  { %48 = vperm.xlu0 %1008, %v38_v6   ;;  %v65_v23 = vrot.slane %v36_v22, %v64_v19  ;;  %v69_v24 = vrot.slane %v36_v22, %v68_v20  ;;  %v131_v30 = vrot.slane %v36_v22, %v130_v25  ;;  %v135_v31 = vrot.slane %v36_v22, %v134_v26  ;;  %p1081_p9 = pnand %p1080_p8, %p1074_p5 }
  0x19   :  { %1011 = vset.pattern.permute.xlu1 %v1100_v0  ;;  %v195_v20 = vsel %vm194_vm0, %v1130_v9, 0 }
  0x1a   :  { %97 = vperm.xlu1 %1011, %v39_v4   ;;  %v75_v28 = vrot.slane %v65_v23, %v64_v19  ;;  %v79_v29 = vrot.slane %v69_v24, %v64_v19  ;;  %v141_v36 = vrot.slane %v131_v30, %v130_v25  ;;  %v145_v37 = vrot.slane %v135_v31, %v130_v25 }
  0x1c   :  { %1012 = vset.pattern.permute.xlu0 %v1102_v5 }
  0x1d   :  { %121 = vperm.xlu0 %1012, %v39_v4  }
  0x1e   :  { %1013 = vset.pattern.permute.xlu1 %v1101_v1 }
  0x1f   :  { %43 = vperm.xlu1 %1013, %v37_v7  }
  0x21   :  { %117 = vperm.xlu0 %1012, %v38_v6  }
  0x23   :  { %1014 = vset.pattern.permute.xlu1 %v1100_v0 }
  0x24   :  { %93 = vperm.xlu1 %1014, %v38_v6  }
  0x25   :  { %113 = vperm.xlu0 %1012, %v37_v7  }
  0x28   :  { %89 = vperm.xlu1 %1014, %v37_v7  }
  0x29   :  { %1016 = vset.pattern.permute.xlu0 %v1104_v11 }
  0x2a   :  { %181 = vperm.xlu0 %1016, %v1132_v10  }
  0x2c   :  { %1015 = vset.pattern.permute.xlu1 %v1104_v11 }
  0x2d   :  { %176 = vperm.xlu1 %1015, %v1130_v9  }
  0x2e   :  { %1017 = vset.pattern.permute.xlu0 %v1101_v1 }
  0x2f   :  { %908 = vperm.xlu0 %1017, %v901_v12  }
  0x31   :  { %186 = vperm.xlu1 %1015, %v1136_v13  }
  0x33   :  { %923 = vperm.xlu0 %1017, %v904_v15  }
  0x35   :  { %191 = vperm.xlu1 %1015, %v1139_v16  }
  0x37   :  { %1020 = vset.pattern.permute.xlu0 %v1102_v5 }
  0x39   :  { %1018 = vset.pattern.permute.xlu1 %v1101_v1 }
  0x3a   :  { %913 = vperm.xlu1 %1018, %v902_v18  }
  0x3e   :  { %918 = vperm.xlu1 %1018, %v903_v21  }
  0x42   :  { %1019 = vset.pattern.permute.xlu1 %v1102_v5 }
  0x43   :  { %954 = vperm.xlu1 %1019, %v905_v27  }
  0x8b   :  { %v102_v32 = vpop.permute.xlu1 %101  ;;  %v59_v33 = vpop.permute.xlu0 %58 }
  0x8c   :  { %v86_v34 = vmul.f32 %v75_v28, %v59_v33  ;;  %v87_v35 = vmul.f32 %v79_v29, %v59_v33 }
  0x8e   :  { %v110_v40 = vadd.f32 %v102_v32, %v86_v34  ;;  %v111_v41 = vadd.f32 %v102_v32, %v87_v35 }
  0x8f   :  { %v54_v38 = vpop.permute.xlu0 %53 }
  0x90   :  { %v126_v39 = vpop.permute.xlu1 %125  ;;  %v84_v48 = vmul.f32 %v75_v28, %v54_v38  ;;  %v85_v49 = vmul.f32 %v79_v29, %v54_v38 }
  0x91   :  { %v152_v42 = vmul.f32 %v141_v36, %v126_v39  ;;  %v153_v43 = vmul.f32 %v145_v37, %v126_v39 }
  0x93   :  { %v160_v44 = vadd.f32 %v152_v42, %v110_v40  ;;  %v161_v45 = vadd.f32 %v153_v43, %v111_v41  ;;  %v49_v46 = vpop.permute.xlu0 %48  ;;  %v199_v40 = vsel %vm194_vm0, %v1136_v13, 0 }
  0x94   :  { %v82_v59 = vmul.f32 %v75_v28, %v49_v46  ;;  %v83_v60 = vmul.f32 %v79_v29, %v49_v46  ;;  %v1199_v13 = vand.u32 4294901760, %v199_v40 }
  0x95   :  { %1021 = vtanh.f32 %v160_v44  ;;  %v98_v47 = vpop.permute.xlu1 %97 }
  0x96   :  { %1023 = vtanh.f32 %v161_v45  ;;  %v108_v51 = vadd.f32 %v98_v47, %v84_v48  ;;  %v109_v52 = vadd.f32 %v98_v47, %v85_v49  ;;  %v201_v47 = vsel %vm194_vm0, %v1139_v16, 0 }
  0x98   :  { %v122_v50 = vpop.permute.xlu0 %121 }
  0x99   :  { %v150_v53 = vmul.f32 %v141_v36, %v122_v50  ;;  %v151_v54 = vmul.f32 %v145_v37, %v122_v50 }
  0x9a   :  { %v44_v55 = vpop.permute.xlu1 %43 }
  0x9b   :  { %v158_v56 = vadd.f32 %v150_v53, %v108_v51  ;;  %v159_v57 = vadd.f32 %v151_v54, %v109_v52  ;;  %v80_v4 = vmul.f32 %v75_v28, %v44_v55  ;;  %v81_v5 = vmul.f32 %v79_v29, %v44_v55 }
  0x9c   :  { %v118_v58 = vpop.permute.xlu0 %117  ;;  %v1162_v28 = vand.u32 4294901760, %v195_v20  ;;  %v197_v29 = vsel %vm194_vm0, %v1132_v10, 0 }
  0x9d   :  { %1025 = vtanh.f32 %v158_v56  ;;  %v148_v62 = vmul.f32 %v141_v36, %v118_v58  ;;  %v149_v63 = vmul.f32 %v145_v37, %v118_v58  ;;  %v1178_v35 = vand.u32 4294901760, %v197_v29 }
  0x9e   :  { %1027 = vtanh.f32 %v159_v57  ;;  %v1176_v34 = vsub.f32 %v195_v20, %v1162_v28  ;;  %v1219_v56 = vsub.f32 %v199_v40, %v1199_v13  ;;  %v1221_v57 = vand.u32 4294901760, %v201_v47 }
  0x9f   :  { %v94_v61 = vpop.permute.xlu1 %93  ;;  %v1195_v44 = vsub.f32 %v197_v29, %v1178_v35 }
  0xa0   :  { %v106_v0 = vadd.f32 %v94_v61, %v82_v59  ;;  %v107_v1 = vadd.f32 %v94_v61, %v83_v60  ;;  %v114_v2 = vpop.permute.xlu0 %113  ;;  %v278_v43 = vand.u32 4294901760, %v1176_v34 }
  0xa1   :  { %v146_v12 = vmul.f32 %v141_v36, %v114_v2  ;;  %v147_v15 = vmul.f32 %v145_v37, %v114_v2  ;;  %v289_v54 = vand.u32 4294901760, %v1195_v44 }
  0xa2   :  { %v1022_v3 = vpop.eup %1021  ;;  %v156_v6 = vadd.f32 %v148_v62, %v106_v0  ;;  %v157_v7 = vadd.f32 %v149_v63, %v107_v1  ;;  %v279_v53 = vsub.f32 %v1176_v34, %v278_v43 }
  0xa3   :  { %v1024_v11 = vpop.eup %1023  ;;  %v90_v18 = vpop.permute.xlu1 %89  ;;  %v1149_v19 = vand.u32 4294901760, %v1022_v3  ;;  %v290_v2 = vsub.f32 %v1195_v44, %v289_v54 }
  0xa4   :  { %1029 = vtanh.f32 %v156_v6  ;;  %v104_v21 = vadd.f32 %v90_v18, %v80_v4  ;;  %v105_v22 = vadd.f32 %v90_v18, %v81_v5  ;;  %v1153_v23 = vand.u32 4294901760, %v1024_v11 }
  0xa5   :  { %1031 = vtanh.f32 %v157_v7  ;;  %v1156_v24 = vsub.f32 %v1022_v3, %v1149_v19  ;;  %v280_v0 = vand.u32 4294901760, %v279_v53  ;;  %v300_v5 = vand.u32 4294901760, %v1219_v56 }
  0xa6   :  { %v154_v25 = vadd.f32 %v146_v12, %v104_v21  ;;  %v155_v26 = vadd.f32 %v147_v15, %v105_v22  ;;  %228 = vmatprep.subr.mxu0 %v1153_v23  ;;  %v1160_v27 = vsub.f32 %v1024_v11, %v1153_v23  ;;  %v1242_v6 = vsub.f32 %v201_v47, %v1221_v57 }
  0xa7   :  { %230 = vmatpush1.msra.mxu0 %v1149_v19  ;;  %v352_v9 = vand.u32 4294901760, %v1156_v24  ;;  %v291_v20 = vand.u32 4294901760, %v290_v2 }
  0xa8   :  { %1033 = vtanh.f32 %v154_v25  ;;  %v346_v30 = vand.u32 4294901760, %v1160_v27  ;;  %v311_v29 = vand.u32 4294901760, %v1242_v6 }
  0xa9   :  { %1035 = vtanh.f32 %v155_v26  ;;  %v353_v31 = vsub.f32 %v1156_v24, %v352_v9  ;;  %v301_v26 = vsub.f32 %v1219_v56, %v300_v5 }
  0xaa   :  { %v1026_v32 = vpop.eup %1025  ;;  %v347_v33 = vsub.f32 %v1160_v27, %v346_v30 }
  0xab   :  { %v1028_v36 = vpop.eup %1027  ;;  %v1180_v10 = vand.u32 4294901760, %v1026_v32  ;;  %v354_v37 = vand.u32 4294901760, %v353_v31 }
  0xac   :  { %v1182_v38 = vand.u32 4294901760, %v1028_v36  ;;  %v348_v39 = vand.u32 4294901760, %v347_v33 }
  0xad   :  { %v1187_v41 = vsub.f32 %v1026_v32, %v1180_v10 }
  0xae   :  { %232 = vmatprep.subr.mxu0 %v1182_v38  ;;  %349 = vmatprep.subr.mxu1 %v348_v39  ;;  %v1191_v42 = vsub.f32 %v1028_v36, %v1182_v38  ;;  %v312_v39 = vsub.f32 %v1242_v6, %v311_v29 }
  0xaf   :  { %234 = vmatpush1.msra.mxu0 %v1180_v10  ;;  %355 = vmatpush1.msra.mxu1 %v354_v37  ;;  %v364_v45 = vand.u32 4294901760, %v1187_v41  ;;  %v302_v37 = vand.u32 4294901760, %v301_v26 }
  0xb0   :  { %v358_v46 = vand.u32 4294901760, %v1191_v42  ;;  %v313_v40 = vand.u32 4294901760, %v312_v39 }
  0xb1   :  { %v1030_v48 = vpop.eup %1029  ;;  %v365_v49 = vsub.f32 %v1187_v41, %v364_v45 }
  0xb2   :  { %v1032_v50 = vpop.eup %1031  ;;  %v1207_v51 = vand.u32 4294901760, %v1030_v48  ;;  %v359_v52 = vsub.f32 %v1191_v42, %v358_v46 }
  0xb3   :  { %v1216_v55 = vand.u32 4294901760, %v1032_v50  ;;  %v366_v16 = vand.u32 4294901760, %v365_v49 }
  0xb4   :  { %v360_v58 = vand.u32 4294901760, %v359_v52  ;;  %v1224_v59 = vsub.f32 %v1030_v48, %v1207_v51  ;;  %v177_v52 = vpop.permute.xlu1 %176 }
  0xb5   :  { %v1034_v60 = vpop.eup %1033  ;;  %236 = vmatprep.subr.mxu0 %v1216_v55  ;;  %v1228_v61 = vsub.f32 %v1032_v50, %v1216_v55 }
  0xb6   :  { %v1036_v62 = vpop.eup %1035  ;;  %238 = vmatpush1.msra.mxu0 %v1207_v51  ;;  %361 = vmatprep.subr.mxu1 %v360_v58  ;;  %v1231_v63 = vand.u32 4294901760, %v1034_v60  ;;  %v376_v1 = vand.u32 4294901760, %v1224_v59 }
  0xb7   :  { %367 = vmatpush1.msra.mxu1 %v366_v16  ;;  %v1237_v3 = vand.u32 4294901760, %v1036_v62  ;;  %v370_v4 = vand.u32 4294901760, %v1228_v61  ;;  %v182_v16 = vpop.permute.xlu0 %181 }
  0xb8   :  { %v377_v7 = vsub.f32 %v1224_v59, %v376_v1  ;;  %v1248_v11 = vsub.f32 %v1034_v60, %v1231_v63 }
  0xb9   :  { %240 = vmatprep.subr.mxu0 %v1237_v3  ;;  %v371_v12 = vsub.f32 %v1228_v61, %v370_v4  ;;  %v381_v15 = vsub.f32 %v1036_v62, %v1237_v3 }
  0xba   :  { %242 = vmatpush1.msra.mxu0 %v1231_v63  ;;  %v378_v18 = vand.u32 4294901760, %v377_v7  ;;  %v388_v21 = vand.u32 4294901760, %v1248_v11 }
  0xbb   :  { %281 = vmatmul.mubr.f32.vlgmr.msra.gmra.mxu0 %v280_v0  ;;  %479 = vmatprep.subr.mxu0 %v1160_v27  ;;  %v372_v22 = vand.u32 4294901760, %v371_v12  ;;  %v382_v25 = vand.u32 4294901760, %v381_v15 }
  0xbc   :  { %482 = vmatpush1.msra.mxu0 %v1156_v24  ;;  %286 = vmatprep.mubr.f32.mxu0 %v1103_v8  ;;  %v389_v31 = vsub.f32 %v1248_v11, %v388_v21 }
  0xbd   :  { %373 = vmatprep.subr.mxu1 %v372_v22  ;;  %485 = vmatprep.subr.mxu0 %v1191_v42  ;;  %v383_v32 = vsub.f32 %v381_v15, %v382_v25 }
  0xbe   :  { %379 = vmatpush1.msra.mxu1 %v378_v18  ;;  %488 = vmatpush1.msra.mxu0 %v1187_v41  ;;  %v390_v33 = vand.u32 4294901760, %v389_v31 }
  0xbf   :  { %292 = vmatmul.mubr.f32.gmra.mxu0 %v291_v20  ;;  %491 = vmatprep.subr.mxu0 %v1228_v61  ;;  %v384_v36 = vand.u32 4294901760, %v383_v32 }
  0xc0   :  { %494 = vmatpush1.msra.mxu0 %v1224_v59  ;;  %297 = vmatprep.mubr.f32.mxu0 %v1103_v8 }
  0xc1   :  { %385 = vmatprep.subr.mxu1 %v384_v36  ;;  %497 = vmatprep.subr.mxu0 %v381_v15 }
  0xc2   :  { %391 = vmatpush1.msra.mxu1 %v390_v33  ;;  %500 = vmatpush1.msra.mxu0 %v1248_v11 }
  0xc3   :  { %303 = vmatmul.mubr.f32.gmra.mxu0 %v302_v37  ;;  %426 = vmatmul.mubr.f32.vlgmr.msra.gmra.mxu1 %v1162_v28 }
  0xc4   :  { %591 = vmatprep.subr.mxu1 %v1153_v23  ;;  %702 = vmatprep.subr.mxu0 %v346_v30 }
  0xc5   :  { %593 = vmatpush1.msra.mxu1 %v1149_v19  ;;  %308 = vmatprep.mubr.f32.mxu0 %v1103_v8 }
  0xc6   :  { %595 = vmatprep.subr.mxu1 %v1182_v38  ;;  %431 = vmatprep.mubr.f32.mxu1 %v1103_v8 }
  0xc7   :  { %597 = vmatpush1.msra.mxu1 %v1180_v10  ;;  %314 = vmatmul.mubr.f32.gmra.mxu0 %v313_v40 }
  0xc8   :  { %433 = vmatmul.mubr.f32.gmra.mxu1 %v1178_v35  ;;  %599 = vmatprep.subr.mxu1 %v1216_v55 }
  0xc9   :  { %601 = vmatpush1.msra.mxu1 %v1207_v51  ;;  %438 = vmatprep.mubr.f32.mxu1 %v1103_v8 }
  0xca   :  { %603 = vmatprep.subr.mxu1 %v1237_v3  ;;  %533 = vmatprep.mubr.f32.mxu0 %v1103_v8 }
  0xcb   :  { %605 = vmatpush1.msra.mxu1 %v1231_v63  ;;  %536 = vmatmul.mubr.f32.vlgmr.msra.gmra.mxu0 %v1176_v34 }
  0xcc   :  { %440 = vmatmul.mubr.f32.gmra.mxu1 %v1199_v13  ;;  %706 = vmatpush1.msra.mxu0 %v352_v9 }
  0xcd   :  { %817 = vmatprep.subr.mxu1 %v1153_v23  ;;  %710 = vmatprep.subr.mxu0 %v358_v46 }
  0xce   :  { %714 = vmatpush1.msra.mxu0 %v364_v45  ;;  %445 = vmatprep.mubr.f32.mxu1 %v1103_v8 }
  0xcf   :  { %541 = vmatprep.mubr.f32.mxu0 %v1103_v8  ;;  %718 = vmatprep.subr.mxu0 %v370_v4 }
  0xd0   :  { %447 = vmatmul.mubr.f32.gmra.mxu1 %v1221_v57  ;;  %544 = vmatmul.mubr.f32.gmra.mxu0 %v1195_v44 }
  0xd1   :  { %722 = vmatpush1.msra.mxu0 %v376_v1  ;;  %549 = vmatprep.mubr.f32.mxu0 %v1103_v8 }
  0xd2   :  { %726 = vmatprep.subr.mxu0 %v382_v25  ;;  %638 = vmatprep.mubr.f32.mxu1 %v1103_v8 }
  0xd3   :  { %730 = vmatpush1.msra.mxu0 %v388_v21 }
  0xd4   :  { %552 = vmatmul.mubr.f32.gmra.mxu0 %v1219_v56  ;;  %642 = vmatmul.mubr.f32.vlgmr.msra.gmra.mxu1 %v278_v43 }
  0xd5   :  { %819 = vmatpush1.msra.mxu1 %v1149_v19  ;;  %557 = vmatprep.mubr.f32.mxu0 %v1103_v8 }
  0xd6   :  { %821 = vmatprep.subr.mxu1 %v1182_v38  ;;  %647 = vmatprep.mubr.f32.mxu1 %v1103_v8 }
  0xd7   :  { %823 = vmatpush1.msra.mxu1 %v1180_v10 }
  0xd8   :  { %825 = vmatprep.subr.mxu1 %v1216_v55  ;;  %560 = vmatmul.mubr.f32.gmra.mxu0 %v1242_v6 }
  0xd9   :  { %651 = vmatmul.mubr.f32.gmra.mxu1 %v289_v54  ;;  %763 = vmatprep.mubr.f32.mxu0 %v1103_v8 }
  0xda   :  { %827 = vmatpush1.msra.mxu1 %v1207_v51  ;;  %656 = vmatprep.mubr.f32.mxu1 %v1103_v8 }
  0xdb   :  { %829 = vmatprep.subr.mxu1 %v1237_v3 }
  0xdc   :  { %831 = vmatpush1.msra.mxu1 %v1231_v63  ;;  %765 = vmatmul.mubr.f32.vlgmr.msra.gmra.mxu0 %v1162_v28 }
  0xdd   :  { %660 = vmatmul.mubr.f32.gmra.mxu1 %v300_v5  ;;  %770 = vmatprep.mubr.f32.mxu0 %v1103_v8 }
  0xde   :  { %665 = vmatprep.mubr.f32.mxu1 %v1103_v8 }
  0xe0   :  { %772 = vmatmul.mubr.f32.gmra.mxu0 %v1178_v35 }
  0xe1   :  { %669 = vmatmul.mubr.f32.gmra.mxu1 %v311_v29  ;;  %777 = vmatprep.mubr.f32.mxu0 %v1103_v8 }
  0xe2   :  { %864 = vmatprep.mubr.f32.mxu1 %v1103_v8 }
  0xe4   :  { %779 = vmatmul.mubr.f32.gmra.mxu0 %v1199_v13 }
  0xe5   :  { %866 = vmatmul.mubr.f32.vlgmr.msra.gmra.mxu1 %v1162_v28  ;;  %784 = vmatprep.mubr.f32.mxu0 %v1103_v8 }
  0xe6   :  { %871 = vmatprep.mubr.f32.mxu1 %v1103_v8 }
  0xe8   :  { %786 = vmatmul.mubr.f32.gmra.mxu0 %v1221_v57 }
  0xe9   :  { %873 = vmatmul.mubr.f32.gmra.mxu1 %v1178_v35 }
  0xea   :  { %878 = vmatprep.mubr.f32.mxu1 %v1103_v8 }
  0xed   :  { %880 = vmatmul.mubr.f32.gmra.mxu1 %v1199_v13 }
  0xee   :  { %885 = vmatprep.mubr.f32.mxu1 %v1103_v8 }
  0xf1   :  { %887 = vmatmul.mubr.f32.gmra.mxu1 %v1221_v57  ;;  %v187_v57 = vpop.permute.xlu1 %186 }
  0xf5   :  { %v192_v7 = vpop.permute.xlu1 %191 }
 0x17b   :  { %v282_v19 = vpop.f32.mrf.mxu0 }
 0x17c   :  { %v283_v59 = vadd.f32 %v282_v19, %v177_v52 }
 0x17d   :  { %v284_v23 = vpop.f32.mrf.mxu0 }
 0x17e   :  { %v285_v1 = vadd.f32 %v284_v23, %v177_v52 }
 0x17f   :  { %v293_v24 = vpop.f32.mrf.mxu0 }
 0x180   :  { %v294_v61 = vadd.f32 %v293_v24, %v182_v16 }
 0x181   :  { %v295_v27 = vpop.f32.mrf.mxu0 }
 0x182   :  { %v296_v4 = vadd.f32 %v295_v27, %v182_v16 }
 0x183   :  { %v304_v28 = vpop.f32.mrf.mxu0  ;;  %v427_v9 = vpop.f32.mrf.mxu1 }
 0x184   :  { %v428_v2 = vadd.f32 %v427_v9, %v283_v59  ;;  %v305_v6 = vadd.f32 %v304_v28, %v187_v57 }
 0x185   :  { %v306_v30 = vpop.f32.mrf.mxu0  ;;  %v429_v34 = vpop.f32.mrf.mxu1 }
 0x186   :  { %v430_v12 = vadd.f32 %v429_v34, %v285_v1  ;;  %v307_v32 = vadd.f32 %v306_v30, %v187_v57  ;;  %v914_v1 = vpop.permute.xlu1 %913 }
 0x187   :  { %v315_v10 = vpop.f32.mrf.mxu0 }
 0x188   :  { %v434_v38 = vpop.f32.mrf.mxu1  ;;  %v316_v26 = vadd.f32 %v315_v10, %v192_v7 }
 0x189   :  { %v317_v41 = vpop.f32.mrf.mxu0  ;;  %v435_v5 = vadd.f32 %v434_v38, %v294_v61 }
 0x18a   :  { %v436_v35 = vpop.f32.mrf.mxu1  ;;  %v318_v34 = vadd.f32 %v317_v41, %v192_v7 }
 0x18b   :  { %v537_v42 = vpop.f32.mrf.mxu0  ;;  %v437_v20 = vadd.f32 %v436_v35, %v296_v4 }
 0x18c   :  { %v441_v43 = vpop.f32.mrf.mxu1  ;;  %v538_v15 = vadd.f32 %v537_v42, %v428_v2 }
 0x18d   :  { %v539_v44 = vpop.f32.mrf.mxu0  ;;  %v442_v33 = vadd.f32 %v441_v43, %v305_v6  ;;  %v919_v6 = vpop.permute.xlu1 %918 }
 0x18e   :  { %v443_v45 = vpop.f32.mrf.mxu1  ;;  %v540_v25 = vadd.f32 %v539_v44, %v430_v12 }
 0x18f   :  { %v444_v24 = vadd.f32 %v443_v45, %v307_v32 }
 0x190   :  { %v448_v13 = vpop.f32.mrf.mxu1  ;;  %v545_v8 = vpop.f32.mrf.mxu0 }
 0x191   :  { %v546_v21 = vadd.f32 %v545_v8, %v435_v5  ;;  %v449_v38 = vadd.f32 %v448_v13, %v316_v26  ;;  %v909_v5 = vpop.permute.xlu0 %908 }
 0x192   :  { %v450_v46 = vpop.f32.mrf.mxu1  ;;  %v547_v47 = vpop.f32.mrf.mxu0 }
 0x193   :  { %v548_v36 = vadd.f32 %v547_v47, %v437_v20  ;;  %v451_v43 = vadd.f32 %v450_v46, %v318_v34 }
 0x194   :  { %v553_v48 = vpop.f32.mrf.mxu0  ;;  %v643_v49 = vpop.f32.mrf.mxu1 }
 0x195   :  { %v644_v29 = vadd.f32 %v643_v49, %v538_v15  ;;  %v554_v27 = vadd.f32 %v553_v48, %v442_v33 }
 0x196   :  { %v555_v50 = vpop.f32.mrf.mxu0  ;;  %v645_v51 = vpop.f32.mrf.mxu1 }
 0x197   :  { %v646_v39 = vadd.f32 %v645_v51, %v540_v25  ;;  %v556_v10 = vadd.f32 %v555_v50, %v444_v24 }
 0x198   :  { %v561_v53 = vpop.f32.mrf.mxu0 }
 0x199   :  { %v652_v54 = vpop.f32.mrf.mxu1  ;;  %v562_v47 = vadd.f32 %v561_v53, %v449_v38  ;;  %v1105_v38 = vmov 1966171168  }
 0x19a   :  { %v563_v55 = vpop.f32.mrf.mxu0  ;;  %v653_v37 = vadd.f32 %v652_v54, %v546_v21 }
 0x19b   :  { %v654_v56 = vpop.f32.mrf.mxu1  ;;  %v564_v48 = vadd.f32 %v563_v55, %v451_v43 }
 0x19c   :  { %v766_v58 = vpop.f32.mrf.mxu0  ;;  %v655_v28 = vadd.f32 %v654_v56, %v548_v36 }
 0x19d   :  { %v661_v60 = vpop.f32.mrf.mxu1  ;;  %v767_v40 = vadd.f32 %v766_v58, %v644_v29 }
 0x19e   :  { %v768_v62 = vpop.f32.mrf.mxu0  ;;  %v662_v8 = vadd.f32 %v661_v60, %v554_v27 }
 0x19f   :  { %v663_v63 = vpop.f32.mrf.mxu1  ;;  %v769_v35 = vadd.f32 %v768_v62, %v646_v39 }
 0x1a0   :  { %v773_v0 = vpop.f32.mrf.mxu0  ;;  %v664_v16 = vadd.f32 %v663_v63, %v556_v10 }
 0x1a1   :  { %v670_v3 = vpop.f32.mrf.mxu1  ;;  %v774_v9 = vadd.f32 %v773_v0, %v653_v37 }
 0x1a2   :  { %v775_v11 = vpop.f32.mrf.mxu0  ;;  %v671_v13 = vadd.f32 %v670_v3, %v562_v47  ;;  %v955_v47 = vpop.permute.xlu1 %954 }
 0x1a3   :  { %v672_v18 = vpop.f32.mrf.mxu1  ;;  %v776_v49 = vadd.f32 %v775_v11, %v655_v28 }
 0x1a4   :  { %v780_v22 = vpop.f32.mrf.mxu0  ;;  %v673_v60 = vadd.f32 %v672_v18, %v564_v48 }
 0x1a5   :  { %v867_v31 = vpop.f32.mrf.mxu1  ;;  %v781_v57 = vadd.f32 %v780_v22, %v662_v8 }
 0x1a6   :  { %v782_v19 = vpop.f32.mrf.mxu0  ;;  %v868_v42 = vadd.f32 %v867_v31, %v767_v40  ;;  %v924_v31 = vpop.permute.xlu0 %923 }
 0x1a7   :  { %v869_v23 = vpop.f32.mrf.mxu1  ;;  %v783_v56 = vadd.f32 %v782_v19, %v664_v16 }
 0x1a8   :  { %v870_v52 = vadd.f32 %v869_v23, %v769_v35  ;;  %v787_v51 = vpop.f32.mrf.mxu0  ;;  %v963_v35 = vunpack.c.l.s4 %v1105_v38 }
 0x1a9   :  { %v874_v44 = vpop.f32.mrf.mxu1  ;;  %v788_v46 = vadd.f32 %v787_v51, %v671_v13 }
 0x1aa   :  { %v875_v30 = vadd.f32 %v874_v44, %v774_v9  ;;  %v789_v50 = vpop.f32.mrf.mxu0 }
 0x1ab   :  { %v876_v54 = vpop.f32.mrf.mxu1  ;;  %v790_v62 = vadd.f32 %v789_v50, %v673_v60 }
 0x1ac   :  { %1037 = vtanh.f32 %v875_v30  ;;  %v877_v45 = vadd.f32 %v876_v54, %v776_v49  ;;  %v964_v49 = vunpack.c.0.s8 %v963_v35 }
 0x1ad   :  { %1039 = vtanh.f32 %v868_v42  ;;  %v881_v41 = vpop.f32.mrf.mxu1 }
 0x1ae   :  { %1041 = vtanh.f32 %v877_v45  ;;  %v882_v58 = vadd.f32 %v881_v41, %v781_v57  ;;  %v967_v51 = vsub.s32 %v964_v49, %v1143_v17 }
 0x1af   :  { %1043 = vtanh.f32 %v870_v52  ;;  %v883_v59 = vpop.f32.mrf.mxu1 }
 0x1b0   :  { %1045 = vtanh.f32 %v882_v58  ;;  %v884_v53 = vadd.f32 %v883_v59, %v783_v56 }
 0x1b1   :  { %v888_v61 = vpop.f32.mrf.mxu1 }
 0x1b2   :  { %1047 = vtanh.f32 %v884_v53  ;;  %v889_v63 = vadd.f32 %v888_v61, %v788_v46 }
 0x1b3   :  { %v890_v0 = vpop.f32.mrf.mxu1 }
 0x1b4   :  { %1049 = vtanh.f32 %v889_v63  ;;  %v891_v55 = vadd.f32 %v890_v0, %v790_v62 }
 0x1b6   :  { %1051 = vtanh.f32 %v891_v55 }
 0x1b9   :  { %v1038_v2 = vpop.eup %1037 }
 0x1ba   :  { %v1040_v3 = vpop.eup %1039  ;;  %v928_v11 = vmul.f32 %v1038_v2, %v914_v1 }
 0x1bb   :  { %v1042_v4 = vpop.eup %1041  ;;  %v926_v15 = vmul.f32 %v1040_v3, %v909_v5 }
 0x1bc   :  { %v1044_v7 = vpop.eup %1043  ;;  %v929_v18 = vmul.f32 %v1042_v4, %v914_v1 }
 0x1bd   :  { %v1046_v12 = vpop.eup %1045  ;;  %v927_v22 = vmul.f32 %v1044_v7, %v909_v5  ;;  %v934_v25 = vadd.f32 %v928_v11, %v926_v15 }
 0x1be   :  { %v930_v20 = vmul.f32 %v1046_v12, %v919_v6 }
 0x1bf   :  { %v1048_v21 = vpop.eup %1047  ;;  %v943_v32 = vadd.f32 %v929_v18, %v927_v22 }
 0x1c0   :  { %v931_v26 = vmul.f32 %v1048_v21, %v919_v6  ;;  %v935_v33 = vadd.f32 %v934_v25, %v930_v20 }
 0x1c1   :  { %v1050_v29 = vpop.eup %1049 }
 0x1c2   :  { %v932_v36 = vmul.f32 %v1050_v29, %v924_v31  ;;  %v944_v39 = vadd.f32 %v943_v32, %v931_v26 }
 0x1c3   :  { %v1052_v37 = vpop.eup %1051 }
 0x1c4   :  { %v933_v40 = vmul.f32 %v1052_v37, %v924_v31  ;;  %v936_v19 = vadd.f32 %v935_v33, %v932_v36 }
 0x1c6   :  { %v937_v23 = vrot.slane %v936_v19, 4  ;;  %v945_v24 = vadd.f32 %v944_v39, %v933_v40 }
 0x1c8   :  { %v938_v27 = vadd.f32 %v937_v23, %v936_v19  ;;  %v946_v28 = vrot.slane %v945_v24, 4 }
 0x1ca   :  { %v947_v9 = vadd.f32 %v946_v28, %v945_v24  ;;  %v939_v34 = vrot.slane %v938_v27, 2 }
 0x1cc   :  { %v940_v42 = vadd.f32 %v939_v34, %v938_v27  ;;  %v948_v44 = vrot.slane %v947_v9, 2 }
 0x1ce   :  { %v941_v10 = vrot.slane %v940_v42, 1  ;;  %v949_v8 = vadd.f32 %v948_v44, %v947_v9 }
 0x1d0   :  { %v942_v30 = vadd.f32 %v941_v10, %v940_v42  ;;  %v950_v43 = vrot.slane %v949_v8, 1 }
 0x1d2   :  { %v951_v52 = vadd.f32 %v950_v43, %v949_v8  ;;  %v957_v54 = vadd.f32 %v955_v47, %v942_v30 }
 0x1d4   :  { %v958_v16 = vadd.f32 %v955_v47, %v951_v52 }
 0x1d6   :  { %v961_v57 = vcombine.low %v957_v54, %v958_v16 }
 0x1d8   :  { %v968_v45 = vrot.slane %v961_v57, %v967_v51 }
 0x1da   :  { %v975_v48 = vrot.slane %v968_v45, %v967_v51 }
 0x1dc   :  { %981 = vst.msk [vmem:[#allocation5] sm:$0x3] %vm979_vm1, %v975_v48 }
 0x1dd   :  { %1084 = shalt.err (!%p1081_p9)
}
 0x1de   :  { %991 = dma.vmem_to_hbm [thread:$0]  %s989_s1, 32, %s1353_s2, [#allocation4]  }
 0x1df   :  { %1095 = dma.done.wait [#allocation4], 32  }
 0x1e0   :  { %1096 = vsyncadd [#allocation4], 4294967264 }
 0x1e1   :  { %995 = vsyncpa [#allocation3], 1 }
 0x1e2   :  { %996 = vsyncpa [#allocation4], 1 }

</bundles_post_ra>
